<compile_context>
chip_gen: v7x
topology: tpu7x:2x2x1
jax: 0.10.0
libtpu: 0.0.40
codegen_flags: <defaults>
</compile_context>

<pallas_src>
import jax
import jax.numpy as jnp
from jax.experimental import pallas as pl
from jax.experimental.pallas import tpu as pltpu

IN_DIM = 784
HIDDEN = 100
HIDDEN_PAD = 128      # lane-dense hidden dim (zero-padded -> exact)
OUT = 10
OUT_PAD = 16          # compact output slab (block last dim == array dim is legal)
TILE_B_MAX = 4096     # ~25 MiB double-buffered f32 x tile; fits v7x's 64 MiB VMEM
VMEM_LIMIT_BYTES = 48 * 1024 * 1024


def _round_up(n, m):
    return ((n + m - 1) // m) * m


def _mlp_kernel(x_ref, w1_ref, b1_ref, w2_ref, b2_ref, o_ref):
    # x_ref: (tile_b, 784) native dtype | w1: (784,128) bf16 | b1: (1,128) f32
    # w2: (128,16) bf16 | b2: (1,16) f32 | o_ref: (tile_b,16) f32
    x = x_ref[...].astype(jnp.bfloat16)          # cast in-kernel: x read from HBM once
    h = jnp.dot(x, w1_ref[...], preferred_element_type=jnp.float32)
    h = jnp.maximum(h + b1_ref[...], 0.0)        # f32 bias + ReLU on the VPU
    out = jnp.dot(h.astype(w2_ref.dtype), w2_ref[...],
                  preferred_element_type=jnp.float32)
    o_ref[...] = (out + b2_ref[...]).astype(o_ref.dtype)


def fashion_small_forward(x, w1p, b1p, w2p, b2p):
    """x: (B, 1, 28, 28) (or anything reshapeable to (-1, 784)), any float dtype.

    w1p/b1p/w2p/b2p are the zero-padded lane-dense params from pad_params().
    Returns (B, 10) float32 logits.
    """
    x2d = jnp.reshape(x, (-1, IN_DIM))   # free reshape; no dtype cast, no pad pass
    B = x2d.shape[0]

    # Sublane-align the batch only if needed (no-op for multiple-of-8 batches).
    B8 = _round_up(B, 8)
    if B8 != B:
        x2d = jnp.pad(x2d, ((0, B8 - B), (0, 0)))

    tile_b = min(TILE_B_MAX, B8)
    if B8 >= 512:
        # Ensure >= 2 grid steps so ("parallel",) shards across v7x's two TCs.
        tile_b = min(tile_b, _round_up(pl.cdiv(B8, 2), 8))
    grid = (pl.cdiv(B8, tile_b),)        # ragged last block handled by Pallas

    x_bytes = jnp.dtype(x2d.dtype).itemsize
    flops = 2 * B8 * (IN_DIM * HIDDEN_PAD + HIDDEN_PAD * OUT_PAD)
    bytes_accessed = (
        B8 * IN_DIM * x_bytes                               # x (native dtype, one pass)
        + (IN_DIM * HIDDEN_PAD + HIDDEN_PAD * OUT_PAD) * 2  # weights (bf16, resident)
        + (HIDDEN_PAD + OUT_PAD) * 4                        # biases (f32)
        + B8 * OUT_PAD * 4                                  # compact f32 output
    )

    out = pl.pallas_call(
        _mlp_kernel,
        out_shape=jax.ShapeDtypeStruct((B8, OUT_PAD), jnp.float32),
        grid=grid,
        in_specs=[
            pl.BlockSpec((tile_b, IN_DIM), lambda i: (i, 0)),        # x tile
            pl.BlockSpec((IN_DIM, HIDDEN_PAD), lambda i: (0, 0)),    # w1 resident
            pl.BlockSpec((1, HIDDEN_PAD), lambda i: (0, 0)),         # b1 resident
            pl.BlockSpec((HIDDEN_PAD, OUT_PAD), lambda i: (0, 0)),   # w2 resident
            pl.BlockSpec((1, OUT_PAD), lambda i: (0, 0)),            # b2 resident
        ],
        out_specs=pl.BlockSpec((tile_b, OUT_PAD), lambda i: (i, 0)),
        compiler_params=pltpu.CompilerParams(
            dimension_semantics=("parallel",),
            vmem_limit_bytes=VMEM_LIMIT_BYTES),
        cost_estimate=pl.CostEstimate(
            flops=flops, transcendentals=0, bytes_accessed=bytes_accessed),
    )(x2d, w1p, b1p, w2p, b2p)

    return out[:B, :OUT]


def init_params(key):
    """Deterministic PyTorch-style (uniform +-1/sqrt(fan_in)) init, f32."""
    k1, k2, k3, k4 = jax.random.split(key, 4)
    bound1 = 1.0 / (IN_DIM ** 0.5)
    bound2 = 1.0 / (HIDDEN ** 0.5)
    # Stored pre-transposed as (in_features, out_features) for the kernel.
    w1 = jax.random.uniform(k1, (IN_DIM, HIDDEN), jnp.float32, -bound1, bound1)
    b1 = jax.random.uniform(k2, (1, HIDDEN), jnp.float32, -bound1, bound1)
    w2 = jax.random.uniform(k3, (HIDDEN, OUT), jnp.float32, -bound2, bound2)
    b2 = jax.random.uniform(k4, (1, OUT), jnp.float32, -bound2, bound2)
    return w1, b1, w2, b2


def pad_params(w1, b1, w2, b2):
    """Zero-pad to lane-dense / compact shapes and cast weights to bf16 (once).

    Exactness: padded hidden columns get 0-weight and 0-bias, so h_pad = ReLU(0)
    = 0, and the corresponding w2 rows are 0; padded output columns are 0 and
    get sliced off by the wrapper.
    """
    w1p = jnp.zeros((IN_DIM, HIDDEN_PAD), jnp.bfloat16)
    w1p = w1p.at[:, :HIDDEN].set(w1.astype(jnp.bfloat16))
    b1p = jnp.zeros((1, HIDDEN_PAD), jnp.float32).at[:, :HIDDEN].set(b1)
    w2p = jnp.zeros((HIDDEN_PAD, OUT_PAD), jnp.bfloat16)
    w2p = w2p.at[:HIDDEN, :OUT].set(w2.astype(jnp.bfloat16))
    b2p = jnp.zeros((1, OUT_PAD), jnp.float32).at[:, :OUT].set(b2)
    return w1p, b1p, w2p, b2p


if __name__ == "__main__":
    key = jax.random.PRNGKey(0)
    kx, kp = jax.random.split(key)

    # Small batch of FashionMNIST-shaped inputs (NCHW like PyTorch), native f32.
    x = jax.random.normal(kx, (8, 1, 28, 28), jnp.float32)
    w1, b1, w2, b2 = init_params(kp)
    w1p, b1p, w2p, b2p = pad_params(w1, b1, w2, b2)

    out = fashion_small_forward(x, w1p, b1p, w2p, b2p)
    out = jax.block_until_ready(out)
    assert out.shape == (8, 10)
    assert out.dtype == jnp.float32

    x2d = x.reshape(-1, IN_DIM)
    # Reference with matching bf16 casts (should agree tightly).
    h_ref = jnp.maximum(
        jnp.dot(x2d.astype(jnp.bfloat16), w1.astype(jnp.bfloat16),
                preferred_element_type=jnp.float32) + b1, 0.0)
    ref_bf16 = jnp.dot(h_ref.astype(jnp.bfloat16), w2.astype(jnp.bfloat16),
                       preferred_element_type=jnp.float32) + b2
    assert jnp.allclose(out, ref_bf16, atol=1e-2, rtol=1e-2)

    # Loose check against the pure-f32 reference (bf16 quantization noise only).
    ref_f32 = jnp.maximum(x2d @ w1 + b1, 0.0) @ w2 + b2
    assert jnp.allclose(out, ref_f32, atol=5e-2, rtol=5e-2)

    print("KERNEL_OK")
</pallas_src>

<mosaic_0001>
module attributes {stable_mosaic.version = 11 : i64} {
  func.func @_mlp_kernel(%arg0: i32, %arg1: memref<8x784xf32, #tpu.memory_space<vmem>>, %arg2: memref<784x128xbf16, #tpu.memory_space<vmem>>, %arg3: memref<1x128xf32, #tpu.memory_space<vmem>>, %arg4: memref<128x16xbf16, #tpu.memory_space<vmem>>, %arg5: memref<1x16xf32, #tpu.memory_space<vmem>>, %arg6: memref<8x16xf32, #tpu.memory_space<vmem>>) attributes {dimension_semantics = [#tpu.dimension_semantics<parallel>], iteration_bounds = array<i64: 1>, scalar_prefetch = 0 : i64, scratch_operands = 0 : i64, tpu.core_type = #tpu.core_type<tc>, window_params = [{transform_indices = @transform_0, window_bounds = array<i64: 8, 784>}, {pipeline_mode = #tpu.pipeline_mode<synchronous>, transform_indices = @transform_1, window_bounds = array<i64: 784, 128>}, {pipeline_mode = #tpu.pipeline_mode<synchronous>, transform_indices = @transform_2, window_bounds = array<i64: 1, 128>}, {pipeline_mode = #tpu.pipeline_mode<synchronous>, transform_indices = @transform_3, window_bounds = array<i64: 128, 16>}, {pipeline_mode = #tpu.pipeline_mode<synchronous>, transform_indices = @transform_4, window_bounds = array<i64: 1, 16>}, {transform_indices = @transform_5, window_bounds = array<i64: 8, 16>}]} {
    %c0 = arith.constant 0 : index
    %c0_0 = arith.constant 0 : index
    %0 = vector.load %arg1[%c0, %c0_0] : memref<8x784xf32, #tpu.memory_space<vmem>>, vector<8x784xf32>
    %1 = arith.truncf %0 : vector<8x784xf32> to vector<8x784xbf16>
    %c0_1 = arith.constant 0 : index
    %c0_2 = arith.constant 0 : index
    %2 = vector.load %arg2[%c0_1, %c0_2] : memref<784x128xbf16, #tpu.memory_space<vmem>>, vector<784x128xbf16>
    %cst = arith.constant dense<0.000000e+00> : vector<8x128xf32>
    %3 = tpu.matmul %1, %2, %cst {dimension_numbers = #tpu.dot_dimension_numbers<[1], [0], [0], [1], [0, 0, 1, 1], [], []>} : vector<8x784xbf16>, vector<784x128xbf16>, vector<8x128xf32> -> vector<8x128xf32>
    %c0_3 = arith.constant 0 : index
    %c0_4 = arith.constant 0 : index
    %4 = vector.load %arg3[%c0_3, %c0_4] : memref<1x128xf32, #tpu.memory_space<vmem>>, vector<1x128xf32>
    %5 = vector.broadcast %4 : vector<1x128xf32> to vector<8x128xf32>
    %6 = arith.addf %3, %5 : vector<8x128xf32>
    %cst_5 = arith.constant 0.000000e+00 : f32
    %7 = vector.broadcast %cst_5 : f32 to vector<8x128xf32>
    %8 = arith.maximumf %6, %7 : vector<8x128xf32>
    %9 = arith.truncf %8 : vector<8x128xf32> to vector<8x128xbf16>
    %c0_6 = arith.constant 0 : index
    %c0_7 = arith.constant 0 : index
    %10 = vector.load %arg4[%c0_6, %c0_7] : memref<128x16xbf16, #tpu.memory_space<vmem>>, vector<128x16xbf16>
    %cst_8 = arith.constant dense<0.000000e+00> : vector<8x16xf32>
    %11 = tpu.matmul %9, %10, %cst_8 {dimension_numbers = #tpu.dot_dimension_numbers<[1], [0], [0], [1], [0, 0, 1, 1], [], []>} : vector<8x128xbf16>, vector<128x16xbf16>, vector<8x16xf32> -> vector<8x16xf32>
    %c0_9 = arith.constant 0 : index
    %c0_10 = arith.constant 0 : index
    %12 = vector.load %arg5[%c0_9, %c0_10] : memref<1x16xf32, #tpu.memory_space<vmem>>, vector<1x16xf32>
    %13 = vector.broadcast %12 : vector<1x16xf32> to vector<8x16xf32>
    %14 = arith.addf %11, %13 : vector<8x16xf32>
    %c0_11 = arith.constant 0 : index
    %c0_12 = arith.constant 0 : index
    %15 = vector.load %arg6[%c0_11, %c0_12] : memref<8x16xf32, #tpu.memory_space<vmem>>, vector<8x16xf32>
    tpu.vector_store %arg6[%c0_11, %c0_12], %14 {strides = array<i32>} : memref<8x16xf32, #tpu.memory_space<vmem>>, vector<8x16xf32>,
    return
  }
  func.func @transform_0(%arg0: i32) -> (i32, i32) {
    %c0_i32 = arith.constant 0 : i32
    %c0_i32_0 = arith.constant 0 : i32
    return %arg0, %c0_i32 : i32, i32
  }
  func.func @transform_1(%arg0: i32) -> (i32, i32) {
    %c0_i32 = arith.constant 0 : i32
    %c0_i32_0 = arith.constant 0 : i32
    %c0_i32_1 = arith.constant 0 : i32
    return %c0_i32, %c0_i32_0 : i32, i32
  }
  func.func @transform_2(%arg0: i32) -> (i32, i32) {
    %c0_i32 = arith.constant 0 : i32
    %c0_i32_0 = arith.constant 0 : i32
    %c0_i32_1 = arith.constant 0 : i32
    return %c0_i32, %c0_i32_0 : i32, i32
  }
  func.func @transform_3(%arg0: i32) -> (i32, i32) {
    %c0_i32 = arith.constant 0 : i32
    %c0_i32_0 = arith.constant 0 : i32
    %c0_i32_1 = arith.constant 0 : i32
    return %c0_i32, %c0_i32_0 : i32, i32
  }
  func.func @transform_4(%arg0: i32) -> (i32, i32) {
    %c0_i32 = arith.constant 0 : i32
    %c0_i32_0 = arith.constant 0 : i32
    %c0_i32_1 = arith.constant 0 : i32
    return %c0_i32, %c0_i32_0 : i32, i32
  }
  func.func @transform_5(%arg0: i32) -> (i32, i32) {
    %c0_i32 = arith.constant 0 : i32
    %c0_i32_0 = arith.constant 0 : i32
    return %arg0, %c0_i32 : i32, i32
  }
}

</mosaic_0001>

<bundles_post_ra>
// kernel: tpu_custom_call.1
= control target key start
LH: loop header
LB: loop body
LE: loop exit
PB: predicated region body
PF: predicated region fallthrough
CT: control target
= control target key end

     0   :  { %10 = vsyncpa [#allocation3], 0  ;;  %s1142_s0 = inlined_call_operand.vmem [shape: f32[8,784], index: 0, kind: input, shape index: {}]   ;;  %s1143_s1 = inlined_call_operand.hbm [shape: bf16[784,128], index: 1, kind: input, shape index: {}]   ;;  %s1144_s2 = inlined_call_operand.vmem [shape: f32[1,128], index: 2, kind: input, shape index: {}]   ;;  %s1145_s3 = inlined_call_operand.vmem [shape: bf16[128,16], index: 3, kind: input, shape index: {}]   ;;  %s1146_s4 = inlined_call_operand.vmem [shape: f32[1,16], index: 4, kind: input, shape index: {}]   ;;  %s1147_s5 = inlined_call_operand.hbm [shape: f32[8,16], index: 5, kind: output, shape index: {}]  }
   0x1   :  { %11 = vsyncpa [#allocation4], 0  ;;  %s1016_s18 = smov [#allocation2]   ;;  %s968_s22 = scalar_lea.hbm %s1143_s1, 6272 }
   0x2   :  { %s19_s19 = sshll.u32 %s1016_s18, 4  ;;  %p969_p0 = scmp.ne.s32.totalorder %s1143_s1, %s968_s22  ;;  %s20_s19 = int_to_ptr.vmem [resolvable:$true] %s19_s19 }
   0x3   :  { %p972_p1 = scmp.lt.u32.totalorder %s968_s22, %s1143_s1 }
   0x5   :  { %p974_p2 = pnand %p972_p1, %p969_p0 }
   0x7   :  { %977 = shalt.err (!%p974_p2)
}
   0x8   :  { %s978_s27 = scalar_lea.vmem %s20_s19, 6272  ;;  %p983_p4 = scmp.lt.s32.totalorder %s20_s19, %s20_s19 }
   0x9   :  { %p979_p3 = scmp.ne.s32.totalorder %s20_s19, %s978_s27  ;;  %p984_p5 = scmp.lt.s32.totalorder %s978_s27, %s978_s27 }
   0xb   :  { %p985_p6 = por %p984_p5, %p983_p4 }
   0xd   :  { %p986_p7 = pnand %p985_p6, %p979_p3 }
   0xf   :  { %989 = shalt.err (!%p986_p7)
}
  0x10   :  { %s1017_s28 = smov 64   ;;  %s1018_s29 = smov 4  }
  0x11   :  { %25 = dma.hbm_to_vmem [thread:$0]  %s1143_s1, 6272, %s20_s19, [#allocation3], %s1017_s28, %s1017_s28, %s1018_s29  }
  0x12   :  { %1012 = dma.done.wait [#allocation3], 6272  }
  0x13   :  { %1013 = vsyncadd [#allocation3], 4294961024  ;;  %v911_v0 = vld [vmem:[#allocation2 + $0x40] sm:$0xff]   ;;  %v915_v4 = vld [vmem:[#allocation2 + $0x48] sm:$0xff]   ;;  %v1019_v44 = vmov 0.0   ;;  %vm1020_vm0 = vmmov 0  }
  0x14   :  { %v912_v1 = vld [vmem:[#allocation2] sm:$0xff]   ;;  %802 = vmatprep.subr.bf16.mxu0 %v911_v0  ;;  %v916_v5 = vld [vmem:[#allocation2 + $0x8] sm:$0xff]   ;;  %v919_v8 = vld [vmem:[#allocation2 + $0x50] sm:$0xff]   ;;  %vm449_vm1 = vcmask 130048   ;;  %s1021_s11 = smov [#allocation5]  }
  0x15   :  { %v913_v2 = vld [vmem:[#allocation2 + $0xc0] sm:$0xff]   ;;  %803 = vmatpush3.bf16.msra.mxu0 %v912_v1  ;;  %v917_v6 = vld [vmem:[#allocation2 + $0xc8] sm:$0xff]   ;;  %v920_v9 = vld [vmem:[#allocation2 + $0x10] sm:$0xff]   ;;  %s733_s12 = sshll.u32 %s1021_s11, 4  ;;  %s734_s12 = int_to_ptr.vmem [resolvable:$true] %s733_s12 }
  0x16   :  { %v914_v3 = vld [vmem:[#allocation2 + $0x80] sm:$0xff]   ;;  %824 = vmatprep.subr.bf16.mxu1 %v913_v2  ;;  %804 = vmatprep.subr.bf16.mxu0 %v915_v4  ;;  %v918_v7 = vld [vmem:[#allocation2 + $0x88] sm:$0xff]   ;;  %v921_v10 = vld [vmem:[#allocation2 + $0xd0] sm:$0xff]   ;;  %s990_s13 = scalar_lea.vmem %s734_s12, 128  ;;  %p995_p9 = scmp.lt.s32.totalorder %s734_s12, %s734_s12 }
  0x17   :  { %825 = vmatpush3.bf16.msra.mxu1 %v914_v3  ;;  %v922_v11 = vld [vmem:[#allocation2 + $0x90] sm:$0xff]   ;;  %v923_v12 = vld [vmem:[#allocation2 + $0x58] sm:$0xff]   ;;  %v927_v16 = vld [vmem:[#allocation2 + $0x60] sm:$0xff]   ;;  %p991_p8 = scmp.ne.s32.totalorder %s734_s12, %s990_s13  ;;  %p996_p10 = scmp.lt.s32.totalorder %s990_s13, %s990_s13 }
  0x18   :  { %826 = vmatprep.subr.bf16.mxu1 %v917_v6  ;;  %v924_v13 = vld [vmem:[#allocation2 + $0x18] sm:$0xff]   ;;  %v928_v17 = vld [vmem:[#allocation2 + $0x20] sm:$0xff]   ;;  %v931_v20 = vld [vmem:[#allocation2 + $0x68] sm:$0xff]  }
  0x19   :  { %805 = vmatpush3.bf16.msra.mxu0 %v916_v5  ;;  %v925_v14 = vld [vmem:[#allocation2 + $0xd8] sm:$0xff]   ;;  %v929_v18 = vld [vmem:[#allocation2 + $0xe0] sm:$0xff]   ;;  %v932_v21 = vld [vmem:[#allocation2 + $0x28] sm:$0xff]   ;;  %p997_p11 = por %p996_p10, %p995_p9 }
  0x1a   :  { %806 = vmatprep.subr.bf16.mxu0 %v919_v8  ;;  %v926_v15 = vld [vmem:[#allocation2 + $0x98] sm:$0xff]   ;;  %v930_v19 = vld [vmem:[#allocation2 + $0xa0] sm:$0xff]   ;;  %v933_v22 = vld [vmem:[#allocation2 + $0xe8] sm:$0xff]  }
  0x1b   :  { %827 = vmatpush3.bf16.msra.mxu1 %v918_v7  ;;  %v934_v23 = vld [vmem:[#allocation2 + $0xa8] sm:$0xff]   ;;  %v935_v24 = vld [vmem:[#allocation2 + $0x70] sm:$0xff]   ;;  %v939_v28 = vld [vmem:[#allocation2 + $0x78] sm:$0xff]   ;;  %p998_p12 = pnand %p997_p11, %p991_p8 }
  0x1c   :  { %828 = vmatprep.subr.bf16.mxu1 %v921_v10  ;;  %v936_v25 = vld [vmem:[#allocation2 + $0x30] sm:$0xff]   ;;  %v940_v29 = vld [vmem:[#allocation2 + $0x38] sm:$0xff]   ;;  %v37_v31 = vld [vmem:[%s1142_s0 + $0x8] sm:$0xff] }
  0x1d   :  { %807 = vmatpush3.bf16.msra.mxu0 %v920_v9  ;;  %v937_v26 = vld [vmem:[#allocation2 + $0xf0] sm:$0xff]   ;;  %v941_v30 = vld [vmem:[#allocation2 + $0xf8] sm:$0xff]   ;;  %v44_v32 = vpack.c.bf16 %v37_v31, %v37_v31  ;;  %v36_v34 = vld [vmem:[%s1142_s0] sm:$0xff] }
  0x1e   :  { %808 = vmatprep.subr.bf16.mxu0 %v923_v12  ;;  %v938_v27 = vld [vmem:[#allocation2 + $0xb0] sm:$0xff]   ;;  %v942_v33 = vld [vmem:[#allocation2 + $0xb8] sm:$0xff]   ;;  %v43_v35 = vpack.c.bf16 %v36_v34, %v36_v34  ;;  %v943_v36 = vld [vmem:[#allocation2 + $0x140] sm:$0xff]  }
  0x1f   :  { %829 = vmatpush3.bf16.msra.mxu1 %v922_v11  ;;  %v39_v37 = vld [vmem:[%s1142_s0 + $0x18] sm:$0xff]  ;;  %485 = vmatprep.mubr.bf16.mxu0 %v44_v32  ;;  %v944_v39 = vld [vmem:[#allocation2 + $0x100] sm:$0xff]   ;;  %v38_v40 = vld [vmem:[%s1142_s0 + $0x10] sm:$0xff] }
  0x20   :  { %830 = vmatprep.subr.bf16.mxu1 %v925_v14  ;;  %v46_v38 = vpack.c.bf16 %v39_v37, %v39_v37  ;;  %v45_v41 = vpack.c.bf16 %v38_v40, %v38_v40  ;;  %v945_v42 = vld [vmem:[#allocation2 + $0x148] sm:$0xff]   ;;  %v947_v45 = vld [vmem:[#allocation2 + $0x150] sm:$0xff]   ;;  %v949_v47 = vld [vmem:[#allocation2 + $0x158] sm:$0xff]  }
  0x21   :  { %809 = vmatpush3.bf16.msra.mxu0 %v924_v13  ;;  %v946_v43 = vld [vmem:[#allocation2 + $0x108] sm:$0xff]   ;;  %v948_v46 = vld [vmem:[#allocation2 + $0x110] sm:$0xff]   ;;  %v950_v48 = vld [vmem:[#allocation2 + $0x118] sm:$0xff]  }
  0x22   :  { %810 = vmatprep.subr.bf16.mxu0 %v927_v16  ;;  %525 = vmatprep.mubr.bf16.mxu1 %v46_v38  ;;  %v951_v49 = vld [vmem:[#allocation2 + $0x160] sm:$0xff]   ;;  %v953_v51 = vld [vmem:[#allocation2 + $0x168] sm:$0xff]   ;;  %v955_v55 = vld [vmem:[#allocation2 + $0x170] sm:$0xff]  }
  0x23   :  { %831 = vmatpush3.bf16.msra.mxu1 %v926_v15  ;;  %v952_v50 = vld [vmem:[#allocation2 + $0x120] sm:$0xff]   ;;  %v954_v52 = vld [vmem:[#allocation2 + $0x128] sm:$0xff]   ;;  %v42_v57 = vld [vmem:[%s1142_s0 + $0x30] sm:$0xff] }
  0x24   :  { %832 = vmatprep.subr.bf16.mxu1 %v929_v18  ;;  %v959_v53 = vld [vmem:[#allocation2 + $0x180] sm:$0xff]   ;;  %v41_v54 = vld [vmem:[%s1142_s0 + $0x28] sm:$0xff]  ;;  %v49_v58 = vpack.c.bf16 %v42_v57, %v42_v57  ;;  %v956_v59 = vld [vmem:[#allocation2 + $0x130] sm:$0xff]  }
  0x25   :  { %811 = vmatpush3.bf16.msra.mxu0 %v928_v17  ;;  %v48_v56 = vpack.c.bf16 %v41_v54, %v41_v54  ;;  %v957_v60 = vld [vmem:[#allocation2 + $0x178] sm:$0xff]   ;;  %v40_v62 = vld [vmem:[%s1142_s0 + $0x20] sm:$0xff]  ;;  %v961_v1 = vld [vmem:[%s1145_s3 + $0x8] sm:$0xff]  }
  0x26   :  { %812 = vmatprep.subr.bf16.mxu0 %v931_v20  ;;  %v958_v61 = vld [vmem:[#allocation2 + $0x138] sm:$0xff]   ;;  %v47_v63 = vpack.c.bf16 %v40_v62, %v40_v62  ;;  %v960_v0 = vld [vmem:[%s1145_s3] sm:$0xff]   ;;  %v962_v2 = vld [vmem:[%s1145_s3 + $0x10] sm:$0xff]  }
  0x27   :  { %833 = vmatpush3.bf16.msra.mxu1 %v930_v19  ;;  %v963_v3 = vld [vmem:[%s1145_s3 + $0x18] sm:$0xff]   ;;  %v964_v4 = vld [vmem:[%s1145_s3 + $0x20] sm:$0xff]   ;;  %v965_v5 = vld [vmem:[%s1145_s3 + $0x28] sm:$0xff]  }
  0x28   :  { %834 = vmatprep.subr.bf16.mxu1 %v933_v22  ;;  %v966_v6 = vld [vmem:[%s1145_s3 + $0x30] sm:$0xff]   ;;  %v967_v7 = vld [vmem:[%s1145_s3 + $0x38] sm:$0xff]   ;;  %v742_v9 = vld [vmem:[%s1144_s2] ss:$0 sm:$0xff] }
  0x29   :  { %813 = vmatpush3.bf16.msra.mxu0 %v932_v21  ;;  %v793_v34 = vld [vmem:[%s1146_s4] ss:$0 sm:$0xff] }
  0x2a   :  { %814 = vmatprep.subr.bf16.mxu0 %v935_v24 }
  0x2b   :  { %835 = vmatpush3.bf16.msra.mxu1 %v934_v23 }
  0x2c   :  { %836 = vmatprep.subr.bf16.mxu1 %v937_v26 }
  0x2d   :  { %815 = vmatpush3.bf16.msra.mxu0 %v936_v25 }
  0x2e   :  { %816 = vmatprep.subr.bf16.mxu0 %v939_v28 }
  0x2f   :  { %837 = vmatpush3.bf16.msra.mxu1 %v938_v27 }
  0x30   :  { %838 = vmatprep.subr.bf16.mxu1 %v941_v30 }
  0x31   :  { %817 = vmatpush3.bf16.msra.mxu0 %v940_v29 }
  0x32   :  { %846 = vmatprep.subr.bf16.mxu0 %v943_v36 }
  0x33   :  { %839 = vmatpush3.bf16.msra.mxu1 %v942_v33 }
  0x34   :  { %486 = vmatmul.mubr.bf16.vlgmr.msra.gmra.mrb[0].mxu0 %v43_v35  ;;  %879 = vmatprep.subr.bf16.mxu1 %v1019_v44 }
  0x35   :  { %847 = vmatpush3.bf16.msra.mxu0 %v944_v39  ;;  %565 = vmatprep.mubr.bf16.mxu0 %v48_v56 }
  0x36   :  { %526 = vmatmul.mubr.bf16.vlgmr.msra.gmra.mrb[0].mxu1 %v45_v41  ;;  %848 = vmatprep.subr.bf16.mxu0 %v945_v42 }
  0x37   :  { %881 = vmatprep.mubr.msk.bf16.mxu1 %vm1020_vm0, %v1019_v44  ;;  %880 = vmatpush3.bf16.msra.mxu1 %v959_v53 }
  0x38   :  { %885 = vmatprep.subr.bf16.mxu1 %v1019_v44 }
  0x39   :  { %849 = vmatpush3.bf16.msra.mxu0 %v946_v43 }
  0x3a   :  { %850 = vmatprep.subr.bf16.mxu0 %v947_v45 }
  0x3d   :  { %851 = vmatpush3.bf16.msra.mxu0 %v948_v46 }
  0x3e   :  { %852 = vmatprep.subr.bf16.mxu0 %v949_v47  ;;  %882 = vmatmul.mubr.msk.bf16.vlgmr.msra.gmra.mrb[4].mxu1 %vm449_vm1, %v49_v58 }
  0x3f   :  { %901 = vmatprep.mubr.msk.bf16.mxu1 %vm1020_vm0, %v1019_v44  ;;  %886 = vmatpush3.bf16.msra.mxu1 %v960_v0 }
  0x40   :  { %887 = vmatprep.subr.bf16.mxu1 %v1019_v44 }
  0x41   :  { %853 = vmatpush3.bf16.msra.mxu0 %v950_v48 }
  0x42   :  { %854 = vmatprep.subr.bf16.mxu0 %v951_v49 }
  0x43   :  { %888 = vmatpush3.bf16.msra.mxu1 %v961_v1 }
  0x44   :  { %889 = vmatprep.subr.bf16.mxu1 %v1019_v44 }
  0x45   :  { %855 = vmatpush3.bf16.msra.mxu0 %v952_v50 }
  0x46   :  { %856 = vmatprep.subr.bf16.mxu0 %v953_v51 }
  0x47   :  { %890 = vmatpush3.bf16.msra.mxu1 %v962_v2 }
  0x48   :  { %891 = vmatprep.subr.bf16.mxu1 %v1019_v44 }
  0x49   :  { %857 = vmatpush3.bf16.msra.mxu0 %v954_v52 }
  0x4a   :  { %858 = vmatprep.subr.bf16.mxu0 %v955_v55 }
  0x4b   :  { %892 = vmatpush3.bf16.msra.mxu1 %v963_v3 }
  0x4c   :  { %893 = vmatprep.subr.bf16.mxu1 %v1019_v44 }
  0x4d   :  { %859 = vmatpush3.bf16.msra.mxu0 %v956_v59 }
  0x4e   :  { %860 = vmatprep.subr.bf16.mxu0 %v957_v60 }
  0x4f   :  { %894 = vmatpush3.bf16.msra.mxu1 %v964_v4 }
  0x50   :  { %895 = vmatprep.subr.bf16.mxu1 %v1019_v44 }
  0x51   :  { %861 = vmatpush3.bf16.msra.mxu0 %v958_v61 }
  0x53   :  { %896 = vmatpush3.bf16.msra.mxu1 %v965_v5 }
  0x54   :  { %566 = vmatmul.mubr.bf16.vlgmr.msra.gmra.mrb[4].mxu0 %v47_v63  ;;  %897 = vmatprep.subr.bf16.mxu1 %v1019_v44 }
  0x57   :  { %898 = vmatpush3.bf16.msra.mxu1 %v966_v6 }
  0x58   :  { %899 = vmatprep.subr.bf16.mxu1 %v1019_v44 }
  0x5b   :  { %900 = vmatpush3.bf16.msra.mxu1 %v967_v7 }
 0x107   :  { %v818_v8 = vpop.f32.mrb[0].mxu0 }
 0x108   :  { %v819_v10 = vpop.f32.mrb[1].mxu0 }
 0x109   :  { %v820_v11 = vadd.f32 %v819_v10, %v818_v8  ;;  %v821_v12 = vpop.f32.mrb[2].mxu0  ;;  %v840_v13 = vpop.f32.mrb[0].mxu1 }
 0x10a   :  { %v822_v14 = vpop.f32.mrb[3].mxu0  ;;  %v841_v16 = vpop.f32.mrb[1].mxu1 }
 0x10b   :  { %v488_v15 = vadd.f32 %v820_v11, %v742_v9  ;;  %v842_v17 = vadd.f32 %v841_v16, %v840_v13  ;;  %v843_v18 = vpop.f32.mrb[2].mxu1 }
 0x10c   :  { %v844_v19 = vpop.f32.mrb[3].mxu1 }
 0x10d   :  { %v528_v20 = vadd.f32 %v842_v17, %v488_v15 }
 0x111   :  { %v607_v21 = vpop.f32.mrb[4].mxu1 }
 0x112   :  { %v883_v22 = vpop.f32.mrb[5].mxu1 }
 0x113   :  { %v610_v23 = vpop.f32.mrb[6].mxu1 }
 0x114   :  { %v884_v24 = vpop.f32.mrb[7].mxu1 }
 0x127   :  { %v862_v25 = vpop.f32.mrb[4].mxu0 }
 0x128   :  { %v863_v26 = vpop.f32.mrb[5].mxu0 }
 0x129   :  { %v864_v27 = vadd.f32 %v863_v26, %v862_v25  ;;  %v865_v28 = vpop.f32.mrb[6].mxu0 }
 0x12a   :  { %v866_v29 = vpop.f32.mrb[7].mxu0 }
 0x12b   :  { %v568_v30 = vadd.f32 %v864_v27, %v528_v20 }
 0x12d   :  { %v608_v31 = vadd.f32 %v607_v21, %v568_v30 }
 0x12f   :  { %v613_v32 = vmax.f32 %v608_v31, 0.0 }
 0x131   :  { %v614_v33 = vpack.c.bf16 %v613_v32, %v613_v32 }
 0x133   :  { %902 = vmatmul.mubr.bf16.vlgmr.msra.gmra.mrb[8].mxu1 %v614_v33 }
 0x206   :  { %v720_v35 = vpop.f32.mrb[8].mxu1 }
 0x207   :  { %v721_v36 = vadd.f32 %v793_v34, %v720_v35  ;;  %v903_v37 = vpop.f32.mrb[9].mxu1 }
 0x208   :  { %v723_v38 = vpop.f32.mrb[10].mxu1 }
 0x209   :  { %726 = vst.msk [vmem:[#allocation5] sm:$0xff] %vm449_vm1, %v721_v36  ;;  %v904_v39 = vpop.f32.mrb[11].mxu1 }
 0x20a   :  { %1001 = shalt.err (!%p998_p12)
}
 0x20b   :  { %s1002_s4 = scalar_lea.hbm %s1147_s5, 128 }
 0x20c   :  { %p1003_p13 = scmp.ne.s32.totalorder %s1147_s5, %s1002_s4  ;;  %p1006_p0 = scmp.lt.u32.totalorder %s1002_s4, %s1147_s5 }
 0x20e   :  { %p1008_p1 = pnand %p1006_p0, %p1003_p13 }
 0x210   :  { %1011 = shalt.err (!%p1008_p1)
}
 0x211   :  { %736 = dma.vmem_to_hbm [thread:$0]  %s734_s12, 128, %s1147_s5, [#allocation4]  }
 0x212   :  { %1014 = dma.done.wait [#allocation4], 128  }
 0x213   :  { %1015 = vsyncadd [#allocation4], 4294967168 }
 0x214   :  { %740 = vsyncpa [#allocation3], 1 }
 0x215   :  { %741 = vsyncpa [#allocation4], 1 }

</bundles_post_ra>
